<compile_context>
chip_gen: v6e
topology: v6e:2x2x1
jax: 0.10.0
libtpu: 0.0.40
codegen_flags: <defaults>
</compile_context>

<pallas_src>
import jax
import jax.numpy as jnp
from jax.experimental import pallas as pl
from jax.experimental.pallas import tpu as pltpu


def _discriminator_kernel(x_ref, w1_ref, b1_ref, w2_ref, b2_ref,
                          w3_ref, b3_ref, out_ref):
    mxu_dtype = w1_ref.dtype          # f32, or bf16 when use_bf16=True

    # Layer 1: tanh(x @ W1 + b1)  (f32 accumulation, f32 activation)
    x = x_ref[...].astype(mxu_dtype)
    h1 = jnp.tanh(
        jnp.dot(x, w1_ref[...], preferred_element_type=jnp.float32)
        + b1_ref[...])

    # Layer 2: tanh(h1 @ W2 + b2)
    h2 = jnp.tanh(
        jnp.dot(h1.astype(mxu_dtype), w2_ref[...],
                preferred_element_type=jnp.float32)
        + b2_ref[...])

    # Layer 3 (N == 1): contract over hidden with w3 as a (1, H) row and h2 as
    # the (transposed) rhs -> logits land directly in lane-dense (1, TB) form.
    logits = jax.lax.dot_general(
        w3_ref[...], h2,
        dimension_numbers=(((1,), (1,)), ((), ())),
        preferred_element_type=jnp.float32) + b3_ref[...]

    out_ref[...] = jax.nn.sigmoid(logits).astype(out_ref.dtype)


def _round_up(n, m):
    return ((n + m - 1) // m) * m


def discriminator_forward(x, params, *, block_b=512, use_bf16=False):
    """x: (B, num_inputs) float32 -> (B, 1) probability in (0, 1)."""
    w1, b1 = params["w1"], params["b1"]
    w2, b2 = params["w2"], params["b2"]
    w3, b3 = params["w3"], params["b3"]
    num_inputs, hidden = w1.shape
    B = x.shape[0]

    if use_bf16:  # bf16 MXU inputs (v6e/v7x native); f32 accumulation kept.
        w1 = w1.astype(jnp.bfloat16)
        w2 = w2.astype(jnp.bfloat16)

    w3_row = w3.reshape(1, hidden)    # (1, H) row for the transposed layer-3 dot
    b3_sc = b3.reshape(1, 1)

    # Batch tile: big enough to pipeline, never larger than the padded batch.
    # Per-tile VMEM footprint is tiny (TB<=512 rows), well within the v7x
    # 32 MiB default scoped VMEM, so no vmem_limit_bytes override is needed.
    tb = min(block_b, _round_up(B, 8))
    num_blocks = pl.cdiv(B, tb)
    b_pad = num_blocks * tb
    if b_pad != B:
        x = jnp.pad(x, ((0, b_pad - B), (0, 0)))

    out = pl.pallas_call(
        _discriminator_kernel,
        out_shape=jax.ShapeDtypeStruct((num_blocks, 1, tb), jnp.float32),
        grid=(num_blocks,),
        in_specs=[
            # x: one batch tile per grid step (auto double-buffered).
            pl.BlockSpec((tb, num_inputs), lambda i: (i, 0)),
            # Weights / biases: constant index_maps -> DMA'd once, VMEM-resident.
            pl.BlockSpec(w1.shape, lambda i: (0, 0)),
            pl.BlockSpec(b1.shape, lambda i: (0, 0)),
            pl.BlockSpec(w2.shape, lambda i: (0, 0)),
            pl.BlockSpec(b2.shape, lambda i: (0, 0)),
            pl.BlockSpec((1, hidden), lambda i: (0, 0)),
            pl.BlockSpec((1, 1), lambda i: (0, 0)),
        ],
        # Lane-dense output row per grid step; leading grid dim squeezed.
        out_specs=pl.BlockSpec((None, 1, tb), lambda i: (i, 0, 0)),
        compiler_params=pltpu.CompilerParams(
            dimension_semantics=("parallel",)),
    )(x, w1, b1, w2, b2, w3_row, b3_sc)

    return out.reshape(b_pad, 1)[:B]


def init_discriminator_params(key, num_inputs, hidden_size):
    """nn.Linear default init (uniform +-1/sqrt(fan_in)), plus the module's
    post-init scaling: linear3.weight *= 0.1, linear3.bias *= 0."""
    k1, k2, k3, k4, k5, k6 = jax.random.split(key, 6)

    def uni(k, shape, fan_in):
        bound = 1.0 / jnp.sqrt(fan_in)
        return jax.random.uniform(k, shape, jnp.float32, -bound, bound)

    # Stored as (in, out) so the kernel does x @ W directly.
    w1 = uni(k1, (num_inputs, hidden_size), num_inputs)
    b1 = uni(k2, (1, hidden_size), num_inputs)
    w2 = uni(k3, (hidden_size, hidden_size), hidden_size)
    b2 = uni(k4, (1, hidden_size), hidden_size)
    w3 = uni(k5, (hidden_size, 1), hidden_size) * 0.1   # linear3.weight.mul_(0.1)
    b3 = uni(k6, (1, 1), hidden_size) * 0.0             # linear3.bias.mul_(0.0)
    return {"w1": w1, "b1": b1, "w2": w2, "b2": b2, "w3": w3, "b3": b3}


def _reference_forward(x, p):
    h1 = jnp.tanh(x @ p["w1"] + p["b1"])
    h2 = jnp.tanh(h1 @ p["w2"] + p["b2"])
    return jax.nn.sigmoid(h2 @ p["w3"] + p["b3"])


if __name__ == "__main__":
    batch = 8
    num_inputs = 16
    hidden_size = 32

    key = jax.random.PRNGKey(0)
    kx, kp, kx2 = jax.random.split(key, 3)
    x = jax.random.normal(kx, (batch, num_inputs), dtype=jnp.float32)
    params = init_discriminator_params(kp, num_inputs, hidden_size)

    # f32 path, single-tile grid.
    prob = jax.block_until_ready(discriminator_forward(x, params))
    ref = _reference_forward(x, params)
    assert prob.shape == (batch, 1)
    assert jnp.allclose(prob, ref, atol=1e-5, rtol=1e-5)

    # Multi-tile grid (non-multiple batch -> padding, VMEM-resident weights
    # across steps) with bf16 MXU inputs (v6e/v7x fast path).
    xb = jax.random.normal(kx2, (300, num_inputs), dtype=jnp.float32)
    prob_b = jax.block_until_ready(
        discriminator_forward(xb, params, block_b=128, use_bf16=True))
    ref_b = _reference_forward(xb, params)
    assert prob_b.shape == (300, 1)
    assert jnp.allclose(prob_b, ref_b, atol=2e-2, rtol=2e-2)

    print("KERNEL_OK")
</pallas_src>

<mosaic_0001>
module attributes {stable_mosaic.version = 11 : i64} {
  func.func @_discriminator_kernel(%arg0: i32, %arg1: memref<8x16xf32, #tpu.memory_space<vmem>>, %arg2: memref<16x32xf32, #tpu.memory_space<vmem>>, %arg3: memref<1x32xf32, #tpu.memory_space<vmem>>, %arg4: memref<32x32xf32, #tpu.memory_space<vmem>>, %arg5: memref<1x32xf32, #tpu.memory_space<vmem>>, %arg6: memref<1x32xf32, #tpu.memory_space<vmem>>, %arg7: memref<1x1xf32, #tpu.memory_space<vmem>>, %arg8: memref<1x1x8xf32, #tpu.memory_space<vmem>>) attributes {dimension_semantics = [#tpu.dimension_semantics<parallel>], iteration_bounds = array<i64: 1>, scalar_prefetch = 0 : i64, scratch_operands = 0 : i64, tpu.core_type = #tpu.core_type<tc>, window_params = [{transform_indices = @transform_0, window_bounds = array<i64: 8, 16>}, {pipeline_mode = #tpu.pipeline_mode<synchronous>, transform_indices = @transform_1, window_bounds = array<i64: 16, 32>}, {pipeline_mode = #tpu.pipeline_mode<synchronous>, transform_indices = @transform_2, window_bounds = array<i64: 1, 32>}, {pipeline_mode = #tpu.pipeline_mode<synchronous>, transform_indices = @transform_3, window_bounds = array<i64: 32, 32>}, {pipeline_mode = #tpu.pipeline_mode<synchronous>, transform_indices = @transform_4, window_bounds = array<i64: 1, 32>}, {pipeline_mode = #tpu.pipeline_mode<synchronous>, transform_indices = @transform_5, window_bounds = array<i64: 1, 32>}, {pipeline_mode = #tpu.pipeline_mode<synchronous>, transform_indices = @transform_6, window_bounds = array<i64: 1, 1>}, {transform_indices = @transform_7, window_bounds = array<i64: 1, 1, 8>}]} {
    %c0 = arith.constant 0 : index
    %c0_0 = arith.constant 0 : index
    %0 = vector.load %arg1[%c0, %c0_0] : memref<8x16xf32, #tpu.memory_space<vmem>>, vector<8x16xf32>
    %c0_1 = arith.constant 0 : index
    %c0_2 = arith.constant 0 : index
    %1 = vector.load %arg2[%c0_1, %c0_2] : memref<16x32xf32, #tpu.memory_space<vmem>>, vector<16x32xf32>
    %cst = arith.constant dense<0.000000e+00> : vector<8x32xf32>
    %2 = tpu.matmul %0, %1, %cst {dimension_numbers = #tpu.dot_dimension_numbers<[1], [0], [0], [1], [0, 0, 1, 1], [], []>} : vector<8x16xf32>, vector<16x32xf32>, vector<8x32xf32> -> vector<8x32xf32>
    %c0_3 = arith.constant 0 : index
    %c0_4 = arith.constant 0 : index
    %3 = vector.load %arg3[%c0_3, %c0_4] : memref<1x32xf32, #tpu.memory_space<vmem>>, vector<1x32xf32>
    %4 = vector.broadcast %3 : vector<1x32xf32> to vector<8x32xf32>
    %5 = arith.addf %2, %4 : vector<8x32xf32>
    %6 = math.tanh %5 : vector<8x32xf32>
    %c0_5 = arith.constant 0 : index
    %c0_6 = arith.constant 0 : index
    %7 = vector.load %arg4[%c0_5, %c0_6] : memref<32x32xf32, #tpu.memory_space<vmem>>, vector<32x32xf32>
    %cst_7 = arith.constant dense<0.000000e+00> : vector<8x32xf32>
    %8 = tpu.matmul %6, %7, %cst_7 {dimension_numbers = #tpu.dot_dimension_numbers<[1], [0], [0], [1], [0, 0, 1, 1], [], []>} : vector<8x32xf32>, vector<32x32xf32>, vector<8x32xf32> -> vector<8x32xf32>
    %c0_8 = arith.constant 0 : index
    %c0_9 = arith.constant 0 : index
    %9 = vector.load %arg5[%c0_8, %c0_9] : memref<1x32xf32, #tpu.memory_space<vmem>>, vector<1x32xf32>
    %10 = vector.broadcast %9 : vector<1x32xf32> to vector<8x32xf32>
    %11 = arith.addf %8, %10 : vector<8x32xf32>
    %12 = math.tanh %11 : vector<8x32xf32>
    %c0_10 = arith.constant 0 : index
    %c0_11 = arith.constant 0 : index
    %13 = vector.load %arg6[%c0_10, %c0_11] : memref<1x32xf32, #tpu.memory_space<vmem>>, vector<1x32xf32>
    %cst_12 = arith.constant dense<0.000000e+00> : vector<1x8xf32>
    %14 = tpu.matmul %13, %12, %cst_12 {dimension_numbers = #tpu.dot_dimension_numbers<[1], [1], [0], [0], [0, 0, 1, 0], [], []>} : vector<1x32xf32>, vector<8x32xf32>, vector<1x8xf32> -> vector<1x8xf32>
    %c0_13 = arith.constant 0 : index
    %c0_14 = arith.constant 0 : index
    %15 = vector.load %arg7[%c0_13, %c0_14] : memref<1x1xf32, #tpu.memory_space<vmem>>, vector<1x1xf32>
    %16 = vector.broadcast %15 : vector<1x1xf32> to vector<1x8xf32>
    %17 = arith.addf %14, %16 : vector<1x8xf32>
    %18 = arith.negf %17 : vector<1x8xf32>
    %19 = math.exp %18 : vector<1x8xf32>
    %cst_15 = arith.constant 1.000000e+00 : f32
    %20 = vector.broadcast %cst_15 : f32 to vector<1x8xf32>
    %21 = arith.addf %20, %19 : vector<1x8xf32>
    %22 = arith.divf %20, %21 : vector<1x8xf32>
    %c0_16 = arith.constant 0 : index
    %c0_17 = arith.constant 0 : index
    %c0_18 = arith.constant 0 : index
    %23 = vector.load %arg8[%c0_16, %c0_17, %c0_18] : memref<1x1x8xf32, #tpu.memory_space<vmem>>, vector<1x1x8xf32>
    %24 = vector.shape_cast %23 : vector<1x1x8xf32> to vector<1x8xf32>
    %25 = vector.shape_cast %22 : vector<1x8xf32> to vector<1x1x8xf32>
    tpu.vector_store %arg8[%c0_16, %c0_17, %c0_18], %25 {strides = array<i32>} : memref<1x1x8xf32, #tpu.memory_space<vmem>>, vector<1x1x8xf32>,
    return
  }
  func.func @transform_0(%arg0: i32) -> (i32, i32) {
    %c0_i32 = arith.constant 0 : i32
    %c0_i32_0 = arith.constant 0 : i32
    return %arg0, %c0_i32 : i32, i32
  }
  func.func @transform_1(%arg0: i32) -> (i32, i32) {
    %c0_i32 = arith.constant 0 : i32
    %c0_i32_0 = arith.constant 0 : i32
    %c0_i32_1 = arith.constant 0 : i32
    return %c0_i32, %c0_i32_0 : i32, i32
  }
  func.func @transform_2(%arg0: i32) -> (i32, i32) {
    %c0_i32 = arith.constant 0 : i32
    %c0_i32_0 = arith.constant 0 : i32
    %c0_i32_1 = arith.constant 0 : i32
    return %c0_i32, %c0_i32_0 : i32, i32
  }
  func.func @transform_3(%arg0: i32) -> (i32, i32) {
    %c0_i32 = arith.constant 0 : i32
    %c0_i32_0 = arith.constant 0 : i32
    %c0_i32_1 = arith.constant 0 : i32
    return %c0_i32, %c0_i32_0 : i32, i32
  }
  func.func @transform_4(%arg0: i32) -> (i32, i32) {
    %c0_i32 = arith.constant 0 : i32
    %c0_i32_0 = arith.constant 0 : i32
    %c0_i32_1 = arith.constant 0 : i32
    return %c0_i32, %c0_i32_0 : i32, i32
  }
  func.func @transform_5(%arg0: i32) -> (i32, i32) {
    %c0_i32 = arith.constant 0 : i32
    %c0_i32_0 = arith.constant 0 : i32
    %c0_i32_1 = arith.constant 0 : i32
    return %c0_i32, %c0_i32_0 : i32, i32
  }
  func.func @transform_6(%arg0: i32) -> (i32, i32) {
    %c0_i32 = arith.constant 0 : i32
    %c0_i32_0 = arith.constant 0 : i32
    %c0_i32_1 = arith.constant 0 : i32
    return %c0_i32, %c0_i32_0 : i32, i32
  }
  func.func @transform_7(%arg0: i32) -> (i32, i32, i32) {
    %c0_i32 = arith.constant 0 : i32
    %c0_i32_0 = arith.constant 0 : i32
    %c0_i32_1 = arith.constant 0 : i32
    return %arg0, %c0_i32, %c0_i32_0 : i32, i32, i32
  }
}

</mosaic_0001>

<bundles_post_ra>
// kernel: tpu_custom_call.1
= control target key start
LH: loop header
LB: loop body
LE: loop exit
PB: predicated region body
PF: predicated region fallthrough
CT: control target
= control target key end

     0   :  { %s567_s0 = inlined_call_operand.hbm [shape: f32[8,16], index: 0, kind: input, shape index: {}]   ;;  %s568_s1 = inlined_call_operand.hbm [shape: f32[16,32], index: 1, kind: input, shape index: {}]   ;;  %s569_s2 = inlined_call_operand.vmem [shape: f32[1,32], index: 2, kind: input, shape index: {}]   ;;  %s570_s3 = inlined_call_operand.hbm [shape: f32[32,32], index: 3, kind: input, shape index: {}]   ;;  %s571_s4 = inlined_call_operand.vmem [shape: f32[1,32], index: 4, kind: input, shape index: {}]   ;;  %s572_s5 = inlined_call_operand.vmem [shape: f32[1,32], index: 5, kind: input, shape index: {}]   ;;  %s573_s6 = inlined_call_operand.<no memory space> [shape: f32[1,1], index: 6, kind: input, shape index: {}]   ;;  %s574_s7 = inlined_call_operand.hbm [shape: f32[1,1,8], index: 7, kind: output, shape index: {}]  }
   0x1   :  { %v12_v0 = vstv %s573_s6 }
   0x2   :  { %13 = vst [vmem:[#allocation2] sm:$0x1] %v12_v0 }
   0x3   :  { %14 = vsyncpa [#allocation4], 0 }
   0x4   :  { %15 = vsyncpa [#allocation7], 0 }
   0x5   :  { %16 = vsyncpa [#allocation5], 0  ;;  %s494_s26 = smov [#allocation6]  }
   0x6   :  { %s32_s27 = sshll.u32 %s494_s26, 4  ;;  %s33_s27 = int_to_ptr.vmem [resolvable:$true] %s32_s27 }
   0x7   :  { %s416_s28 = scalar_lea.vmem %s33_s27, 256  ;;  %p421_p1 = scmp.lt.s32.totalorder %s33_s27, %s33_s27 }
   0x8   :  { %p417_p0 = scmp.ne.s32.totalorder %s33_s27, %s416_s28  ;;  %p422_p2 = scmp.lt.s32.totalorder %s416_s28, %s416_s28 }
   0xa   :  { %p423_p3 = por %p422_p2, %p421_p1 }
   0xc   :  { %p424_p4 = pnand %p423_p3, %p417_p0 }
   0xe   :  { %427 = shalt.err (!%p424_p4)
}
   0xf   :  { %s495_s29 = smov 128   ;;  %s496_s30 = smov 8  }
  0x10   :  { %38 = dma.hbm_to_vmem [thread:$0]  %s568_s1, 256, %s33_s27, [#allocation7], %s495_s29, %s495_s29, %s496_s30  }
  0x11   :  { %s497_s6 = smov [#allocation3]   ;;  %s498_s11 = smov [#allocation8]  }
  0x12   :  { %s23_s10 = sshll.u32 %s497_s6, 4  ;;  %s46_s12 = sshll.u32 %s498_s11, 4  ;;  %s24_s10 = int_to_ptr.vmem [resolvable:$true] %s23_s10  ;;  %s47_s12 = int_to_ptr.vmem [resolvable:$true] %s46_s12 }
  0x13   :  { %s436_s13 = scalar_lea.vmem %s24_s10, 128  ;;  %p441_p6 = scmp.lt.s32.totalorder %s24_s10, %s24_s10 }
  0x14   :  { %p437_p5 = scmp.ne.s32.totalorder %s24_s10, %s436_s13  ;;  %p442_p7 = scmp.lt.s32.totalorder %s436_s13, %s436_s13 }
  0x16   :  { %p443_p8 = por %p442_p7, %p441_p6 }
  0x18   :  { %p444_p9 = pnand %p443_p8, %p437_p5 }
  0x1a   :  { %447 = shalt.err (!%p444_p9)
}
  0x1b   :  { %26 = dma.hbm_to_vmem [thread:$0]  %s567_s0, 128, %s24_s10, [#allocation4]  }
  0x1c   :  { %s456_s16 = scalar_lea.vmem %s47_s12, 512  ;;  %p461_p11 = scmp.lt.s32.totalorder %s47_s12, %s47_s12 }
  0x1d   :  { %p457_p10 = scmp.ne.s32.totalorder %s47_s12, %s456_s16  ;;  %p462_p12 = scmp.lt.s32.totalorder %s456_s16, %s456_s16 }
  0x1f   :  { %p463_p13 = por %p462_p12, %p461_p11 }
  0x21   :  { %p464_p0 = pnand %p463_p13, %p457_p10 }
  0x23   :  { %467 = shalt.err (!%p464_p0)
}
  0x24   :  { %52 = dma.hbm_to_vmem [thread:$0]  %s570_s3, 512, %s47_s12, [#allocation7], %s495_s29, %s495_s29, %s496_s30  }
  0x25   :  { %488 = dma.done.wait [#allocation4], 128  }
  0x26   :  { %489 = vsyncadd [#allocation4], 4294967168 }
  0x27   :  { %490 = dma.done.wait [#allocation7], 768  }
  0x28   :  { %491 = vsyncadd [#allocation7], 4294966528  ;;  %v499_v1 = vmov 0.0   ;;  %vm500_vm0 = vmmov 0   ;;  %v70_v2 = vld [vmem:[#allocation6 + $0x8] sm:$0xff]  ;;  %v69_v3 = vld [vmem:[#allocation6] sm:$0xff]  ;;  %v246_v22 = vlaneseq }
  0x29   :  { %367 = vmatprep.subr.mxu0 %v499_v1  ;;  %371 = vmatprep.mubr.msk.f32.mxu0 %vm500_vm0, %v499_v1  ;;  %v68_v4 = vld [vmem:[#allocation3] sm:$0xff]  ;;  %vm78_vm1 = vcmask 130048   ;;  %v156_v5 = vld [vmem:[#allocation8 + $0x18] sm:$0xff]  ;;  %v155_v6 = vld [vmem:[#allocation8 + $0x10] sm:$0xff]  ;;  %vm164_vm2 = vcmask 261120   ;;  %v501_v15 = vmov 0  }
  0x2a   :  { %374 = vmatprep.subr.mxu1 %v499_v1  ;;  %382 = vmatprep.mubr.msk.f32.mxu1 %vm500_vm0, %v499_v1  ;;  %v154_v7 = vld [vmem:[#allocation8 + $0x8] sm:$0xff]  ;;  %v153_v8 = vld [vmem:[#allocation8] sm:$0xff]  ;;  %v247_v23 = vshrl.u32 %v246_v22, 7  ;;  %vm332_vm3 = vcmask 57344  }
  0x2b   :  { %368 = vmatpush3.msra.mxu0 %v70_v2  ;;  %375 = vmatpush3.msra.mxu1 %v156_v5  ;;  %v350_v9 = vld [vmem:[%s569_s2] ss:$0 sm:$0xff] }
  0x2c   :  { %369 = vmatprep.subr.mxu0 %v499_v1  ;;  %376 = vmatprep.subr.mxu1 %v499_v1  ;;  %v240_v14 = vld [vmem:[#allocation2] sm:$0x1]  ;;  %v248_v24 = vsub.s32 0, %v247_v23 }
  0x2d   :  { %370 = vmatpush3.msra.mxu0 %v69_v3  ;;  %377 = vmatpush3.msra.mxu1 %v155_v6  ;;  %v352_v16 = vld [vmem:[%s571_s4] ss:$0 sm:$0xff]  ;;  %s502_s4 = smov [#allocation9]  }
  0x2e   :  { %372 = vmatmul.mubr.msk.f32.vlgmr.msra.gmra.mxu0 %vm78_vm1, %v68_v4  ;;  %385 = vmatprep.subr.mxu0 %v499_v1  ;;  %v239_v21 = vld [vmem:[%s572_s5] sm:$0x1]  ;;  %s340_s21 = sshll.u32 %s502_s4, 4  ;;  %s341_s21 = int_to_ptr.vmem [resolvable:$true] %s340_s21 }
  0x2f   :  { %387 = vmatprep.mubr.msk.f32.mxu0 %vm500_vm0, %v499_v1  ;;  %378 = vmatprep.subr.mxu1 %v499_v1  ;;  %s468_s5 = scalar_lea.vmem %s341_s21, 16  ;;  %s472_s22 = scalar_lea.vmem %s341_s21, 32 }
  0x30   :  { %379 = vmatpush3.msra.mxu1 %v154_v7  ;;  %399 = vset.pattern.permute.xlu0 %v501_v15  ;;  %p469_p1 = scmp.ne.s32.totalorder %s341_s21, %s468_s5  ;;  %p473_p2 = scmp.lt.s32.totalorder %s341_s21, %s341_s21 }
  0x31   :  { %380 = vmatprep.subr.mxu1 %v499_v1  ;;  %243 = vperm.xlu0 %399, %v240_v14   ;;  %p474_p3 = scmp.lt.s32.totalorder %s472_s22, %s468_s5 }
  0x32   :  { %381 = vmatpush3.msra.mxu1 %v153_v8 }
  0x33   :  { %p475_p4 = por %p474_p3, %p473_p2 }
  0x35   :  { %p476_p5 = pnand %p475_p4, %p469_p1 }
  0xac   :  { %v244_v25 = vpop.permute.xlu0 %243 }
  0xad   :  { %v249_v26 = vrot.slane %v244_v25, %v248_v24 }
  0xee   :  { %v148_v10 = vpop.f32.mrf.mxu0 }
  0xef   :  { %v149_v11 = vadd.f32 %v350_v9, %v148_v10 }
  0xf0   :  { %v373_v12 = vpop.f32.mrf.mxu0 }
  0xf1   :  { %400 = vtanh.f32 %v149_v11 }
  0xfe   :  { %v401_v13 = vpop.eup %400 }
  0xff   :  { %383 = vmatmul.mubr.msk.f32.vlgmr.msra.gmra.mxu1 %vm164_vm2, %v401_v13 }
 0x1bf   :  { %v234_v17 = vpop.f32.mrf.mxu1 }
 0x1c0   :  { %v235_v18 = vadd.f32 %v352_v16, %v234_v17 }
 0x1c1   :  { %v384_v19 = vpop.f32.mrf.mxu1 }
 0x1c2   :  { %402 = vtanh.f32 %v235_v18 }
 0x1cf   :  { %v403_v20 = vpop.eup %402 }
 0x1d0   :  { %386 = vmatpush3.xpose.msk.msra.mxu0 %vm164_vm2, %v403_v20 }
 0x1d3   :  { %388 = vmatmul.mubr.msk.f32.vlgmr.msra.gmra.mxu0 %vm164_vm2, %v239_v21 }
 0x293   :  { %v322_v27 = vpop.f32.mrf.mxu0 }
 0x294   :  { %v323_v28 = vadd.f32 %v322_v27, %v249_v26 }
 0x295   :  { %v389_v29 = vpop.f32.mrf.mxu0 }
 0x296   :  { %v356_v30 = vmul.f32 -1.442695, %v323_v28 }
 0x298   :  { %404 = vpow2.f32 %v356_v30 }
 0x2a5   :  { %v405_v31 = vpop.eup %404 }
 0x2a6   :  { %v329_v32 = vadd.f32 1.0, %v405_v31 }
 0x2a8   :  { %406 = vrcp.f32 %v329_v32 }
 0x2b5   :  { %v407_v33 = vpop.eup %406 }
 0x2b6   :  { %333 = vst.msk [vmem:[#allocation9] sm:$0x1] %vm332_vm3, %v407_v33 }
 0x2b7   :  { %479 = shalt.err (!%p476_p5)
}
 0x2b8   :  { %343 = dma.vmem_to_hbm [thread:$0]  %s341_s21, 16, %s574_s7, [#allocation5]  }
 0x2b9   :  { %492 = dma.done.wait [#allocation5], 16  }
 0x2ba   :  { %493 = vsyncadd [#allocation5], 4294967280 }
 0x2bb   :  { %347 = vsyncpa [#allocation4], 1 }
 0x2bc   :  { %348 = vsyncpa [#allocation7], 1 }
 0x2bd   :  { %349 = vsyncpa [#allocation5], 1 }

</bundles_post_ra>
